<compile_context>
chip_gen: v6e
topology: v6e:2x2x1
jax: 0.10.0
libtpu: 0.0.40
codegen_flags: <defaults>
</compile_context>

<pallas_src>
import math

import jax
import jax.numpy as jnp
from jax import lax
from jax.experimental import pallas as pl
from jax.experimental.pallas import tpu as pltpu


def noisy_linear_kernel(x_ref, w_ref, nw_ref, eo_ref, ei_ref, b_ref, o_ref, acc_ref):
    """Grid = (B tiles, out tiles, in tiles); in (reduction) axis is innermost.

    x_ref  : (tm, tk)   activation tile
    w_ref  : (tn, tk)   weight tile           (PyTorch (out, in) layout)
    nw_ref : (tn, tk)   noisy-weight tile
    eo_ref : (tn, 1)    eps_out slice
    ei_ref : (1,  tk)   eps_in slice
    b_ref  : (1,  tn)   precomputed effective bias slice
    o_ref  : (tm, tn)   output tile
    acc_ref: (tm, tn)   f32 accumulator (resident across the k axis)
    """
    k = pl.program_id(2)

    @pl.when(k == 0)
    def _():
        acc_ref[...] = jnp.zeros_like(acc_ref)

    # Rebuild the rank-1 noise tile on the VPU and form the effective weight.
    w_eff = w_ref[...] + nw_ref[...] * (eo_ref[...] * ei_ref[...])        # (tn, tk)

    # Contract over the shared k axis directly — no explicit transpose.
    acc_ref[...] += lax.dot_general(
        x_ref[...], w_eff,
        dimension_numbers=(((1,), (1,)), ((), ())),
        preferred_element_type=jnp.float32,
    )

    @pl.when(k == pl.num_programs(2) - 1)
    def _():
        o_ref[...] = (acc_ref[...] + b_ref[...]).astype(o_ref.dtype)


def _round_up(x, m):
    return ((x + m - 1) // m) * m


def _pad2d(a, rows, cols):
    if a.shape == (rows, cols):
        return a
    out = jnp.zeros((rows, cols), a.dtype)
    return out.at[: a.shape[0], : a.shape[1]].set(a)


def noisy_linear(x, weight, noisy_weight, eps_out, eps_in, bias, noisy_bias,
                 *, tm=256, tn=512, tk=512):
    """out = x @ (weight + noisy_weight * outer(eps_out, eps_in)).T
             + (bias + noisy_bias * eps_out)

    x:            (B, in_features)
    weight:       (out_features, in_features)
    noisy_weight: (out_features, in_features)
    eps_out:      (out_features,)   factorized noise (sign(e)*sqrt(|e|))
    eps_in:       (in_features,)
    bias:         (out_features,)
    noisy_bias:   (out_features,)
    """
    B, in_f = x.shape
    out_f, _ = weight.shape
    dt = x.dtype

    # Clamp tiles to the (padded) problem size; keep lane dims 128-aligned and
    # sublane dims 8-aligned so BlockSpecs are legal and stores are lane-dense.
    tm = min(tm, _round_up(B, 8))
    tn = min(tn, _round_up(out_f, 128))
    tk = min(tk, _round_up(in_f, 128))

    Bp = _round_up(B, tm)
    Np = _round_up(out_f, tn)
    Kp = _round_up(in_f, tk)

    xp = _pad2d(x, Bp, Kp)
    wp = _pad2d(weight, Np, Kp)
    nwp = _pad2d(noisy_weight, Np, Kp)
    eo = _pad2d(eps_out.reshape(out_f, 1).astype(dt), Np, 1)
    ei = _pad2d(eps_in.reshape(1, in_f).astype(dt), 1, Kp)
    # Fold the bias noise once in the wrapper (O(out_f) work).
    b_eff = _pad2d((bias + noisy_bias * eps_out).reshape(1, out_f).astype(dt), 1, Np)

    grid = (Bp // tm, Np // tn, Kp // tk)

    out = pl.pallas_call(
        noisy_linear_kernel,
        out_shape=jax.ShapeDtypeStruct((Bp, Np), dt),
        grid_spec=pltpu.PrefetchScalarGridSpec(
            num_scalar_prefetch=0,
            grid=grid,
            in_specs=[
                pl.BlockSpec((tm, tk), lambda m, n, k: (m, k)),   # x
                pl.BlockSpec((tn, tk), lambda m, n, k: (n, k)),   # weight
                pl.BlockSpec((tn, tk), lambda m, n, k: (n, k)),   # noisy_weight
                pl.BlockSpec((tn, 1), lambda m, n, k: (n, 0)),    # eps_out
                pl.BlockSpec((1, tk), lambda m, n, k: (0, k)),    # eps_in
                pl.BlockSpec((1, tn), lambda m, n, k: (0, n)),    # effective bias
            ],
            out_specs=pl.BlockSpec((tm, tn), lambda m, n, k: (m, n)),
            scratch_shapes=[pltpu.VMEM((tm, tn), jnp.float32)],
        ),
        compiler_params=pltpu.CompilerParams(
            dimension_semantics=("parallel", "parallel", "arbitrary"),
        ),
    )(xp, wp, nwp, eo, ei, b_eff)

    return out[:B, :out_f]


def init_noisy_linear_params(key, in_features, out_features, sigma0):
    """Mirrors NoisyLinear.__init__ / init_weights / reset_noise_ (factorized=True),
    but keeps the factorized noise as the two generating vectors."""
    s = 1.0 / math.sqrt(in_features)
    k_w, k_b, k_ein, k_eout = jax.random.split(key, 4)

    weight = jax.random.uniform(k_w, (out_features, in_features),
                                minval=-s, maxval=s, dtype=jnp.float32)
    noisy_weight = jnp.full((out_features, in_features), sigma0 * s, dtype=jnp.float32)
    bias = jax.random.uniform(k_b, (out_features,), minval=-s, maxval=s,
                              dtype=jnp.float32)
    noisy_bias = jnp.full((out_features,), sigma0 * s, dtype=jnp.float32)

    # Factorized noise: f(e) = sign(e) * sqrt(|e|)
    f = lambda e: jnp.sign(e) * jnp.sqrt(jnp.abs(e))
    eps_in = f(jax.random.normal(k_ein, (in_features,), dtype=jnp.float32))
    eps_out = f(jax.random.normal(k_eout, (out_features,), dtype=jnp.float32))

    return weight, noisy_weight, eps_out, eps_in, bias, noisy_bias


if __name__ == "__main__":
    key = jax.random.PRNGKey(0)
    B, in_features, out_features = 16, 320, 192
    sigma0 = 0.5

    k_params, k_x = jax.random.split(key)
    (weight, noisy_weight, eps_out, eps_in,
     bias, noisy_bias) = init_noisy_linear_params(k_params, in_features,
                                                  out_features, sigma0)
    x = jax.random.normal(k_x, (B, in_features), dtype=jnp.float32)

    # Small tiles so the demo exercises the full multi-tile pipeline:
    # grid = (B/8, 256/128, 384/128) = (2, 2, 3) after padding.
    out = noisy_linear(x, weight, noisy_weight, eps_out, eps_in, bias, noisy_bias,
                       tm=8, tn=128, tk=128)
    out = jax.block_until_ready(out)

    # Pure-JAX reference identical to the PyTorch module's forward.
    weight_eps = jnp.outer(eps_out, eps_in)
    w_eff = weight + noisy_weight * weight_eps
    b_eff = bias + noisy_bias * eps_out
    ref = jnp.dot(x, w_eff.T, precision=lax.Precision.HIGHEST) + b_eff[None, :]

    assert out.shape == (B, out_features)
    assert jnp.allclose(out, ref, atol=1e-4, rtol=1e-4), (
        float(jnp.max(jnp.abs(out - ref))))

    print("KERNEL_OK")
</pallas_src>

<mosaic_0001>
module attributes {stable_mosaic.version = 11 : i64} {
  func.func @noisy_linear_kernel(%arg0: i32, %arg1: i32, %arg2: i32, %arg3: memref<8x128xf32, #tpu.memory_space<vmem>>, %arg4: memref<128x128xf32, #tpu.memory_space<vmem>>, %arg5: memref<128x128xf32, #tpu.memory_space<vmem>>, %arg6: memref<128x1xf32, #tpu.memory_space<vmem>>, %arg7: memref<1x128xf32, #tpu.memory_space<vmem>>, %arg8: memref<1x128xf32, #tpu.memory_space<vmem>>, %arg9: memref<8x128xf32, #tpu.memory_space<vmem>>, %arg10: memref<8x128xf32, #tpu.memory_space<vmem>>) attributes {dimension_semantics = [#tpu.dimension_semantics<parallel>, #tpu.dimension_semantics<parallel>, #tpu.dimension_semantics<arbitrary>], iteration_bounds = array<i64: 2, 2, 3>, scalar_prefetch = 0 : i64, scratch_operands = 1 : i64, tpu.core_type = #tpu.core_type<tc>, window_params = [{transform_indices = @transform_0, window_bounds = array<i64: 8, 128>}, {transform_indices = @transform_1, window_bounds = array<i64: 128, 128>}, {transform_indices = @transform_2, window_bounds = array<i64: 128, 128>}, {transform_indices = @transform_3, window_bounds = array<i64: 128, 1>}, {transform_indices = @transform_4, window_bounds = array<i64: 1, 128>}, {transform_indices = @transform_5, window_bounds = array<i64: 1, 128>}, {transform_indices = @transform_6, window_bounds = array<i64: 8, 128>}]} {
    %c0_i32 = arith.constant 0 : i32
    %0 = arith.cmpi eq, %arg2, %c0_i32 : i32
    %1 = arith.extui %0 : i1 to i32
    %c0_i32_0 = arith.constant 0 : i32
    %2 = arith.cmpi ne, %1, %c0_i32_0 : i32
    scf.if %2 {
      %cst_15 = arith.constant 0.000000e+00 : f32
      %20 = vector.broadcast %cst_15 : f32 to vector<8x128xf32>
      %c0_16 = arith.constant 0 : index
      %c0_17 = arith.constant 0 : index
      %21 = vector.load %arg10[%c0_16, %c0_17] : memref<8x128xf32, #tpu.memory_space<vmem>>, vector<8x128xf32>
      tpu.vector_store %arg10[%c0_16, %c0_17], %20 {strides = array<i32>} : memref<8x128xf32, #tpu.memory_space<vmem>>, vector<8x128xf32>,
    } else {
    }
    %c0 = arith.constant 0 : index
    %c0_1 = arith.constant 0 : index
    %3 = vector.load %arg4[%c0, %c0_1] : memref<128x128xf32, #tpu.memory_space<vmem>>, vector<128x128xf32>
    %c0_2 = arith.constant 0 : index
    %c0_3 = arith.constant 0 : index
    %4 = vector.load %arg5[%c0_2, %c0_3] : memref<128x128xf32, #tpu.memory_space<vmem>>, vector<128x128xf32>
    %c0_4 = arith.constant 0 : index
    %c0_5 = arith.constant 0 : index
    %5 = vector.load %arg6[%c0_4, %c0_5] : memref<128x1xf32, #tpu.memory_space<vmem>>, vector<128x1xf32>
    %c0_6 = arith.constant 0 : index
    %c0_7 = arith.constant 0 : index
    %6 = vector.load %arg7[%c0_6, %c0_7] : memref<1x128xf32, #tpu.memory_space<vmem>>, vector<1x128xf32>
    %7 = vector.broadcast %5 : vector<128x1xf32> to vector<128x128xf32>
    %8 = vector.broadcast %6 : vector<1x128xf32> to vector<128x128xf32>
    %9 = arith.mulf %7, %8 : vector<128x128xf32>
    %10 = arith.mulf %4, %9 : vector<128x128xf32>
    %11 = arith.addf %3, %10 : vector<128x128xf32>
    %c0_8 = arith.constant 0 : index
    %c0_9 = arith.constant 0 : index
    %12 = vector.load %arg10[%c0_8, %c0_9] : memref<8x128xf32, #tpu.memory_space<vmem>>, vector<8x128xf32>
    %c0_10 = arith.constant 0 : index
    %c0_11 = arith.constant 0 : index
    %13 = vector.load %arg3[%c0_10, %c0_11] : memref<8x128xf32, #tpu.memory_space<vmem>>, vector<8x128xf32>
    %cst = arith.constant dense<0.000000e+00> : vector<8x128xf32>
    %14 = tpu.matmul %13, %11, %cst {dimension_numbers = #tpu.dot_dimension_numbers<[1], [1], [0], [0], [0, 0, 1, 0], [], []>} : vector<8x128xf32>, vector<128x128xf32>, vector<8x128xf32> -> vector<8x128xf32>
    %15 = arith.addf %12, %14 : vector<8x128xf32>
    %c0_12 = arith.constant 0 : index
    %c0_13 = arith.constant 0 : index
    %16 = vector.load %arg10[%c0_12, %c0_13] : memref<8x128xf32, #tpu.memory_space<vmem>>, vector<8x128xf32>
    tpu.vector_store %arg10[%c0_12, %c0_13], %15 {strides = array<i32>} : memref<8x128xf32, #tpu.memory_space<vmem>>, vector<8x128xf32>,
    %c2_i32 = arith.constant 2 : i32
    %17 = arith.cmpi eq, %arg2, %c2_i32 : i32
    %18 = arith.extui %17 : i1 to i32
    %c0_i32_14 = arith.constant 0 : i32
    %19 = arith.cmpi ne, %18, %c0_i32_14 : i32
    scf.if %19 {
      %c0_15 = arith.constant 0 : index
      %c0_16 = arith.constant 0 : index
      %20 = vector.load %arg10[%c0_15, %c0_16] : memref<8x128xf32, #tpu.memory_space<vmem>>, vector<8x128xf32>
      %c0_17 = arith.constant 0 : index
      %c0_18 = arith.constant 0 : index
      %21 = vector.load %arg8[%c0_17, %c0_18] : memref<1x128xf32, #tpu.memory_space<vmem>>, vector<1x128xf32>
      %22 = vector.broadcast %21 : vector<1x128xf32> to vector<8x128xf32>
      %23 = arith.addf %20, %22 : vector<8x128xf32>
      %c0_19 = arith.constant 0 : index
      %c0_20 = arith.constant 0 : index
      %24 = vector.load %arg9[%c0_19, %c0_20] : memref<8x128xf32, #tpu.memory_space<vmem>>, vector<8x128xf32>
      tpu.vector_store %arg9[%c0_19, %c0_20], %23 {strides = array<i32>} : memref<8x128xf32, #tpu.memory_space<vmem>>, vector<8x128xf32>,
    } else {
    }
    return
  }
  func.func @transform_0(%arg0: i32, %arg1: i32, %arg2: i32) -> (i32, i32) {
    %c0_i32 = arith.constant 0 : i32
    return %arg0, %arg2 : i32, i32
  }
  func.func @transform_1(%arg0: i32, %arg1: i32, %arg2: i32) -> (i32, i32) {
    %c0_i32 = arith.constant 0 : i32
    return %arg1, %arg2 : i32, i32
  }
  func.func @transform_2(%arg0: i32, %arg1: i32, %arg2: i32) -> (i32, i32) {
    %c0_i32 = arith.constant 0 : i32
    return %arg1, %arg2 : i32, i32
  }
  func.func @transform_3(%arg0: i32, %arg1: i32, %arg2: i32) -> (i32, i32) {
    %c0_i32 = arith.constant 0 : i32
    %c0_i32_0 = arith.constant 0 : i32
    return %arg1, %c0_i32 : i32, i32
  }
  func.func @transform_4(%arg0: i32, %arg1: i32, %arg2: i32) -> (i32, i32) {
    %c0_i32 = arith.constant 0 : i32
    %c0_i32_0 = arith.constant 0 : i32
    return %c0_i32, %arg2 : i32, i32
  }
  func.func @transform_5(%arg0: i32, %arg1: i32, %arg2: i32) -> (i32, i32) {
    %c0_i32 = arith.constant 0 : i32
    %c0_i32_0 = arith.constant 0 : i32
    return %c0_i32, %arg1 : i32, i32
  }
  func.func @transform_6(%arg0: i32, %arg1: i32, %arg2: i32) -> (i32, i32) {
    %c0_i32 = arith.constant 0 : i32
    return %arg0, %arg1 : i32, i32
  }
}

</mosaic_0001>

<bundles_post_ra>
// kernel: tpu_custom_call.1
= control target key start
LH: loop header
LB: loop body
LE: loop exit
PB: predicated region body
PF: predicated region fallthrough
CT: control target
= control target key end

     0   :  { %s1723_s0 = inlined_call_operand.vmem [shape: f32[16,384], index: 0, kind: input, shape index: {}]   ;;  %s1724_s1 = inlined_call_operand.hbm [shape: f32[256,384], index: 1, kind: input, shape index: {}]   ;;  %s1725_s2 = inlined_call_operand.hbm [shape: f32[256,384], index: 2, kind: input, shape index: {}]   ;;  %s1726_s3 = inlined_call_operand.vmem [shape: f32[256,1], index: 3, kind: input, shape index: {}]   ;;  %s1727_s4 = inlined_call_operand.vmem [shape: f32[1,384], index: 4, kind: input, shape index: {}]   ;;  %s1728_s5 = inlined_call_operand.vmem [shape: f32[1,256], index: 5, kind: input, shape index: {}]   ;;  %s1729_s6 = inlined_call_operand.hbm [shape: f32[16,256], index: 6, kind: output, shape index: {}]  }
   0x1   :  { %1744 = sst [smem:[#allocation24_spill]] %s1724_s1 }
   0x2   :  { %1745 = sst [smem:[#allocation25_spill]] %s1729_s6 }
   0x3   :  { %11 = vsyncpa [#allocation4], 0 }
   0x4   :  { %13 = vsyncpa [#allocation4 + $0x1], 0 }
   0x5   :  { %14 = vsyncpa [#allocation7], 0 }
   0x6   :  { %16 = vsyncpa [#allocation7 + $0x1], 0 }
   0x7   :  { %17 = vsyncpa [#allocation5], 0 }
   0x8   :  { %19 = vsyncpa [#allocation5 + $0x1], 0  ;;  %s1336_s21 = smov 0   ;;  %s1338_s22 = smov 0  }
   0x9   :  { %s1340_s23 = smov 0   ;;  %s1342_s24 = smov 0  }
   0xa   :  { %s1344_s25 = smov 0   ;;  %s1346_s26 = smov 0  }
   0xb   :  { %s1348_s27 = smov 0   ;;  %s1350_s28 = smov 0  }
   0xc   :  { %s1352_s29 = smov 0   ;;  %s1354_s30 = smov 0  }
   0xd   :  { %s1356_s7 = smov 0   ;;  %s1358_s8 = smov 0  }
   0xe   :  { %s1360_s9 = smov 0  }
   0xf LB: > { %1746 = sst [smem:[#allocation12_spill]] %s1241_s21  ;;  %s1730_s10 = sadd.s32 4294967295, %s1289_s9   ;;  %s1289_s9 = sphi %s1360_s9, %s25_s9   ;;  %s1285_s8 = sphi %s1358_s8, %s1782_s8   ;;  %s1281_s7 = sphi %s1356_s7, %s1781_s7   ;;  %s1277_s30 = sphi %s1354_s30, %s1780_s30   ;;  %s1273_s29 = sphi %s1352_s29, %s1779_s29   ;;  %s1269_s28 = sphi %s1350_s28, %s1778_s28   ;;  %s1265_s27 = sphi %s1348_s27, %s1777_s27   ;;  %s1261_s26 = sphi %s1346_s26, %s1776_s26   ;;  %s1257_s25 = sphi %s1344_s25, %s1786_s25   ;;  %s1253_s24 = sphi %s1342_s24, %s1785_s24   ;;  %s1249_s23 = sphi %s1340_s23, %s1774_s23   ;;  %s1245_s22 = sphi %s1338_s22, %s1784_s22   ;;  %s1241_s21 = sphi %s1336_s21, %s1783_s21  }
  0x10   : > { %1747 = sst [smem:[#allocation13_spill]] %s1249_s23  ;;  %s37_s12 = sadd.s32 1, %s1277_s30 }
  0x11   : > { %1748 = sst [smem:[#allocation14_spill]] %s1261_s26  ;;  %s40_s13 = sadd.s32 1, %s1281_s7 }
  0x12   : > { %1749 = sst [smem:[#allocation15_spill]] %s1277_s30  ;;  %p38_p0 = scmp.ge.s32.totalorder %s37_s12, 3 }
  0x13   : > { %1750 = sst [smem:[#allocation16_spill]] %s1281_s7  ;;  %s44_s14 = sadd.s32 1, %s1285_s8 }
  0x14   : > { %1751 = sst [smem:[#allocation17_spill]] %s1285_s8  ;;  %s81_s15 = sadd.s32 1, %s1261_s26 }
  0x15   : > { %p88_p1 = scmp.ne.s32.totalorder %s1261_s26, %s1257_s25  ;;  %s1788_s12 = smov (%p38_p0, %s37_s12), 0 }
  0x16   : > { %1752 = sst [smem:[#allocation18_spill]] %s1788_s12  ;;  %s1790_s13 = smov (!%p38_p0, %s40_s13), %s1281_s7 }
  0x17   : > { %s77_s16 = ssub.s32 %s1277_s30, %s1788_s12  ;;  %p89_p2 = scmp.eq.s32.totalorder %s1289_s9, 0 }
  0x18   : > { %p42_p3 = scmp.ge.s32.totalorder %s1790_s13, 2  ;;  %p94_p4 = scmp.ne.s32.totalorder %s1257_s25, %s1253_s24 }
  0x19   : > { %p1417_p5 = por %p89_p2, %p88_p1  ;;  %p95_p6 = scmp.eq.s32.totalorder %s1730_s10, 0 }
  0x1a   : > { %s1792_s13 = smov (%p42_p3, %s1790_s13), 0  ;;  %s1794_s14 = smov (!%p42_p3, %s44_s14), %s1285_s8 }
  0x1b   : > { %1754 = sst [smem:[#allocation19_spill]] %s1792_s13  ;;  %s76_s18 = ssub.s32 %s1281_s7, %s1792_s13 }
  0x1c   : > { %p1428_p7 = por %p95_p6, %p94_p4  ;;  %p46_p8 = scmp.ge.s32.totalorder %s1794_s14, 2 }
  0x1d   : > { %s78_s20 = sor.u32 %s77_s16, %s76_s18  ;;  %s215_s24 = sadd.s32 1, %s1249_s23 }
  0x1e   : > { %p79_p9 = scmp.eq.s32.totalorder %s78_s20, 0  ;;  %s1796_s14 = smov (%p46_p8, %s1794_s14), 0 }
  0x1f   : > { %1756 = sst [smem:[#allocation20_spill]] %s1796_s14  ;;  %s210_s10 = ssub.s32 %s1285_s8, %s1796_s14 }
  0x20   : > { %s1436_s11 = scalar_select %p79_p9, %s1261_s26, %s81_s15  }
  0x21   : > { %p225_p10 = scmp.ne.s32.totalorder %s1249_s23, %s1245_s22  ;;  %s212_s13 = sor.u32 %s210_s10, %s76_s18 }
  0x22   : > { %1757 = sst [smem:[#allocation21_spill]] %s1436_s11  ;;  %s1758_s12 = sadd.s32 4294967295, %s1289_s9  }
  0x23   : > { %p226_p11 = scmp.eq.s32.totalorder %s1758_s12, 11  ;;  %p213_p12 = scmp.eq.s32.totalorder %s212_s13, 0 }
  0x24   : > { %p231_p13 = scmp.ne.s32.totalorder %s1245_s22, %s1241_s21  ;;  %s1760_s20 = sadd.s32 4294967294, %s1289_s9  }
  0x25   : > { %p1446_p0 = por %p226_p11, %p225_p10  ;;  %p232_p1 = scmp.eq.s32.totalorder %s1760_s20, 11 }
  0x26   : > { %s1453_s6 = scalar_select %p213_p12, %s1249_s23, %s215_s24  }
  0x27   : > { %p1455_p2 = por %p232_p1, %p231_p13  ;;  %p978_p3 = scmp.lt.s32.totalorder %s1289_s9, 12 }
  0x28   : > { %1761 = sst [smem:[#allocation22_spill]] %s1453_s6  ;;  %s1461_s14 = sand.u32 1, %s1261_s26  }
  0x29   : > { %s1762_s15 = scalar_select %p1455_p2, 1, 0 }
  0x2a   : > { %s1739_s10 = sshll.u32 %s1461_s14, 7  ;;  %s958_s12 = smul.u32 48, %s1281_s7 }
  0x2b   : > { %1763 = sst [smem:[#allocation23_spill]] %s1762_s15  ;;  %s267_s13 = scalar_lea.vmem [#allocation3], %s1739_s10 }
  0x2c   : > { %s276_s18 = sshll.u32 %s267_s13, 4  ;;  %p1469_p4 = pnand %p978_p3, %p1417_p5  ;;  %s277_s18 = int_to_ptr.vmem [resolvable:$true] %s276_s18 }
  0x2d   : > { %s273_s24 = sadd.s32 %s1277_s30, %s958_s12  ;;  %s1765_s1 = sld [smem:[#allocation24_spill]] }
  0x2e   : > { %s885_s8 = sshll.u32 %s273_s24, 7  ;;  %s264_s23 = scalar_lea.sflag [#allocation4], %s1461_s14 }
  0x2f   : > { %p1095_p6 = pneg %p1469_p4  ;;  %s1106_s7 = scalar_lea.vmem %s277_s18, 2048 }
  0x30   : > { %p1107_p8 = scmp.ne.s32.totalorder %s277_s18, %s1106_s7  ;;  %s1291_s17 = smov [#allocation3]  }
  0x31   : > { %s1111_s13 = sshll.u32 %s1291_s17, 4  ;;  %s1112_s13 = int_to_ptr.vmem [resolvable:$false] %s1111_s13 }
  0x32   : > { %p1109_p5 = pnand %p1107_p8, %p1095_p6  ;;  %s1113_s10 = scalar_lea.vmem %s1112_s13, 4096 }
  0x33   : > { %s275_s6 = scalar_lea.hbm %s1765_s1, %s885_s8  ;;  %p1114_p10 = scmp.lt.s32.totalorder %s277_s18, %s1112_s13 }
  0x34   : > { %p1110_p9 = pneg %p1109_p5  ;;  %p1115_p11 = scmp.lt.s32.totalorder %s1113_s10, %s1106_s7 }
  0x36   : > { %p1116_p12 = por %p1115_p11, %p1114_p10 }
  0x38   : > { %p1117_p13 = pnand %p1116_p12, %p1110_p9 }
  0x3a   : > { %1120 = shalt.err (!%p1117_p13)
}
  0x3b   : > { %s1292_s26 = smov 384   ;;  %s1293_s11 = smov 128  }
  0x3c   : > { %s1294_s12 = smov 8   ;;  %p890_p1 = scmp.ge.s32.totalorder %s1289_s9, 1 }
  0x3d   : > { %970 = dma.hbm_to_vmem [thread:$0]  (!%p1469_p4), %s275_s6, 2048, %s277_s18, %s264_s23, %s1292_s26, %s1293_s11, %s1294_s12  }
  0x3e   : > { %p328_p3 = scmp.lt.s32.totalorder %s1289_s9, 13  ;;  %s298_s17 = scalar_lea.hbm %s1725_s2, %s885_s8 }
  0x3f   : > { %s1767_s13 = sshll.u32 %s1461_s14, 7  ;;  %s287_s15 = scalar_lea.sflag [#allocation7], %s1461_s14 }
  0x40   : > { %p1488_p8 = pnand %p890_p1, %p328_p3  ;;  %s290_s1 = scalar_lea.vmem [#allocation6], %s1767_s13 }
  0x41   : > { %s299_s30 = sshll.u32 %s290_s1, 4  ;;  %s1295_s6 = smov [#allocation6]   ;;  %s300_s30 = int_to_ptr.vmem [resolvable:$true] %s299_s30 }
  0x42   : > { %s1134_s21 = scalar_lea.vmem %s300_s30, 2048  ;;  %s1139_s23 = sshll.u32 %s1295_s6, 4  ;;  %s1140_s23 = int_to_ptr.vmem [resolvable:$false] %s1139_s23 }
  0x43   : > { %p1135_p5 = scmp.ne.s32.totalorder %s300_s30, %s1134_s21  ;;  %s1141_s18 = scalar_lea.vmem %s1140_s23, 4096 }
  0x44   : > { %p1142_p11 = scmp.lt.s32.totalorder %s300_s30, %s1140_s23  ;;  %p1143_p12 = scmp.lt.s32.totalorder %s1141_s18, %s1134_s21 }
  0x45   : > { %p1137_p9 = pnand %p1135_p5, %p1095_p6 }
  0x46   : > { %p1144_p13 = por %p1143_p12, %p1142_p11 }
  0x47   : > { %p1138_p10 = pneg %p1137_p9 }
  0x49   : > { %p1145_p1 = pnand %p1144_p13, %p1138_p10 }
  0x4b   : > { %1148 = shalt.err (!%p1145_p1)
}
  0x4c   : > { %973 = dma.hbm_to_vmem [thread:$0]  (!%p1469_p4), %s298_s17, 2048, %s300_s30, %s287_s15, %s1292_s26, %s1293_s11, %s1294_s12  }
  0x4d   : > { %332 = sbr.rel (%p1488_p8) target bundleno = 530 (0x212), region = 44  ;;  %s334_s1 = sand.u32 (!%p1488_p8), 1, %s1257_s25  }
  0x4e   : > { %s891_s8 = sshll.u32 (!%p1488_p8), %s334_s1, 7  ;;  %s335_s14 = scalar_lea.sflag (!%p1488_p8), [#allocation4], %s334_s1 }
  0x4f   : > { %s1507_s7 = scalar_lea.vmem (!%p1488_p8), [#allocation3], %s891_s8 }
  0x52   : > { %1228 = dma.done.wait (%p1428_p7), %s335_s14, 2048  }
  0x53   : > { %1230 = vsyncadd (%p1428_p7), %s335_s14, 4294965248  ;;  %s344_s21 = scalar_lea.sflag [#allocation7], %s334_s1  ;;  %s1513_s20 = scalar_lea.vmem [#allocation6], %s891_s8 }
  0x54   : > { %1232 = dma.done.wait (%p1428_p7), %s344_s21, 2048  }
  0x55   : > { %1234 = vsyncadd (%p1428_p7), %s344_s21, 4294965248  ;;  %s1743_s30 = sand.u32 1, %s1245_s22   ;;  %p400_p4 = scmp.lt.s32.totalorder %s1273_s29, 1 }
  0x56   : > { %s1523_s15 = sshll.u32 %s1743_s30, 3  ;;  %p402_p6 = scmp.lt.s32.totalorder %s1265_s27, 2 }
  0x57   : > { %s895_s26 = sshll.u32 %s1269_s28, 4  ;;  %p419_p3 = scmp.lt.s32.totalorder %s1269_s28, 1 }
  0x58   : > { %s401_s11 = scalar_select %p400_p4, %s1273_s29, 1 }
  0x59   : > { %s1529_s19 = scalar_select %p402_p6, %s1265_s27, 2 }
  0x5a   : > { %s960_s12 = smul.u32 3, %s401_s11  ;;  %p411_p7 = scmp.lt.s32.totalorder %s895_s26, 31 }
  0x5b   : > { %s418_s17 = scalar_lea.vmem %s1727_s4, %s1529_s19  ;;  %p897_p8 = scmp.ne.s32.totalorder %s1265_s27, 0 }
  0x5c   : > { %s405_s13 = sadd.s32 %s960_s12, %s1529_s19  ;;  %s1798_s26 = smov (!%p411_p7, %s895_s26), 31 }
  0x5d   : > { %s894_s6 = sshll.u32 %s405_s13, 3  ;;  %s896_s14 = sshll.u32 %s1798_s26, 3 }
  0x5e   : > { %s1540_s1 = scalar_lea.vmem %s1723_s0, %s894_s6  ;;  %s1548_s30 = scalar_lea.vmem %s1726_s3, %s896_s14 }
  0x5f   : > { %s1543_s8 = scalar_select %p419_p3, %s1269_s28, 1 }
  0x60   : > { %s399_s13 = scalar_lea.vmem [#allocation8], %s1523_s15  ;;  %425 = sbr.rel (%p897_p8) target bundleno = 103 (0x67), region = 56 }
  0x61   : > { %s421_s12 = scalar_lea.vmem %s1728_s5, %s1543_s8 }
  0x65   : > { %v1296_v0 = vmov 0.0  }
  0x66   : > { %426 = vst [vmem:[#allocation2] sm:$0xff] %v1296_v0 }
  0x67 PF: > { %v474_v1 = vld [vmem:[%s1548_s30 + $0x78] sm:$0xff]  ;;  %v472_v2 = vld [vmem:[%s1548_s30 + $0x68] sm:$0xff]  ;;  %v1297_v3 = vmov 0   ;;  %v473_v4 = vld [vmem:[%s1548_s30 + $0x70] sm:$0xff]  ;;  %v1298_v6 = vmov 0.0   ;;  %vm1299_vm0 = vmmov 0  }
  0x68   : > { %1092 = vset.pattern.permute.xlu1 %v1297_v3  ;;  %1091 = vset.pattern.permute.xlu0 %v1297_v3  ;;  %v471_v5 = vld [vmem:[%s1548_s30 + $0x60] sm:$0xff]  ;;  %v470_v7 = vld [vmem:[%s1548_s30 + $0x58] sm:$0xff]  ;;  %v469_v8 = vld [vmem:[%s1548_s30 + $0x50] sm:$0xff]  ;;  %p899_p5 = scmp.ne.s32.totalorder %s1265_s27, 2 }
  0x69   : > { %553 = vperm.xlu0 %1091, %v474_v1   ;;  %543 = vperm.xlu1 %1092, %v472_v2   ;;  %v468_v9 = vld [vmem:[%s1548_s30 + $0x48] sm:$0xff]  ;;  %v467_v10 = vld [vmem:[%s1548_s30 + $0x40] sm:$0xff]  ;;  %v466_v11 = vld [vmem:[%s1548_s30 + $0x38] sm:$0xff] }
  0x6a   : > { %923 = vmatprep.subr.mxu0 %v1298_v6  ;;  %v465_v12 = vld [vmem:[%s1548_s30 + $0x30] sm:$0xff]  ;;  %v464_v13 = vld [vmem:[%s1548_s30 + $0x28] sm:$0xff]  ;;  %v463_v14 = vld [vmem:[%s1548_s30 + $0x20] sm:$0xff]  ;;  %955 = vmatprep.mubr.msk.f32.mxu0 %vm1299_vm0, %v1298_v6 }
  0x6b   : > { %v462_v15 = vld [vmem:[%s1548_s30 + $0x18] sm:$0xff]  ;;  %v461_v16 = vld [vmem:[%s1548_s30 + $0x10] sm:$0xff]  ;;  %v460_v17 = vld [vmem:[%s1548_s30 + $0x8] sm:$0xff] }
  0x6c   : > { %v459_v18 = vld [vmem:[%s1548_s30] sm:$0xff]  ;;  %v456_v27 = vld [vmem:[%s1513_s20 + $0x68] sm:$0xff]  ;;  %v457_v29 = vld [vmem:[%s1513_s20 + $0x70] sm:$0xff] }
  0x6d   : > { %548 = vperm.xlu0 %1091, %v473_v4   ;;  %538 = vperm.xlu1 %1092, %v471_v5   ;;  %v1579_v19 = vld [vmem:[%s418_s17] ss:$0 sm:$0xff]  ;;  %v441_v32 = vld [vmem:[%s1507_s7 + $0x70] sm:$0xff]  ;;  %v440_v36 = vld [vmem:[%s1507_s7 + $0x68] sm:$0xff] }
  0x6e   : > { %v458_v21 = vld [vmem:[%s1513_s20 + $0x78] sm:$0xff]  ;;  %v455_v39 = vld [vmem:[%s1513_s20 + $0x60] sm:$0xff]  ;;  %v453_v50 = vld [vmem:[%s1513_s20 + $0x50] sm:$0xff] }
  0x6f   : > { %v442_v24 = vld [vmem:[%s1507_s7 + $0x78] sm:$0xff]  ;;  %v439_v46 = vld [vmem:[%s1507_s7 + $0x60] sm:$0xff]  ;;  %v452_v56 = vld [vmem:[%s1513_s20 + $0x48] sm:$0xff] }
  0x70   : > { %v454_v44 = vld [vmem:[%s1513_s20 + $0x58] sm:$0xff]  ;;  %v437_v58 = vld [vmem:[%s1507_s7 + $0x50] sm:$0xff]  ;;  %v451_v62 = vld [vmem:[%s1513_s20 + $0x40] sm:$0xff] }
  0x71   : > { %533 = vperm.xlu0 %1091, %v470_v7   ;;  %528 = vperm.xlu1 %1092, %v469_v8   ;;  %v438_v52 = vld [vmem:[%s1507_s7 + $0x58] sm:$0xff]  ;;  %v436_v0 = vld [vmem:[%s1507_s7 + $0x48] sm:$0xff]  ;;  %v435_v7 = vld [vmem:[%s1507_s7 + $0x40] sm:$0xff] }
  0x72   : > { %v450_v4 = vld [vmem:[%s1513_s20 + $0x38] sm:$0xff] }
  0x75   : > { %523 = vperm.xlu0 %1091, %v468_v9   ;;  %518 = vperm.xlu1 %1092, %v467_v10  }
  0x79   : > { %513 = vperm.xlu0 %1091, %v466_v11   ;;  %508 = vperm.xlu1 %1092, %v465_v12   ;;  %v449_v11 = vld [vmem:[%s1513_s20 + $0x30] sm:$0xff] }
  0x7d   : > { %503 = vperm.xlu0 %1091, %v464_v13   ;;  %498 = vperm.xlu1 %1092, %v463_v14   ;;  %v434_v13 = vld [vmem:[%s1507_s7 + $0x38] sm:$0xff] }
  0x81   : > { %493 = vperm.xlu0 %1091, %v462_v15   ;;  %488 = vperm.xlu1 %1092, %v461_v16  }
  0x85   : > { %483 = vperm.xlu0 %1091, %v460_v17   ;;  %478 = vperm.xlu1 %1092, %v459_v18   ;;  %v448_v17 = vld [vmem:[%s1513_s20 + $0x28] sm:$0xff] }
  0xe4   : > { %v554_v20 = vpop.permute.xlu0 %553  ;;  %v544_v23 = vpop.permute.xlu1 %543 }
  0xe5   : > { %v577_v22 = vmul.f32 %v1579_v19, %v554_v20  ;;  %v575_v26 = vmul.f32 %v1579_v19, %v544_v23  ;;  %v433_v20 = vld [vmem:[%s1507_s7 + $0x30] sm:$0xff] }
  0xe7   : > { %v593_v25 = vmul.f32 %v577_v22, %v458_v21  ;;  %v591_v33 = vmul.f32 %v575_v26, %v456_v27  ;;  %v432_v26 = vld [vmem:[%s1507_s7 + $0x28] sm:$0xff] }
  0xe8   : > { %v549_v28 = vpop.permute.xlu0 %548  ;;  %v539_v35 = vpop.permute.xlu1 %538 }
  0xe9   : > { %v576_v30 = vmul.f32 %v1579_v19, %v549_v28  ;;  %v609_v31 = vadd.f32 %v593_v25, %v442_v24  ;;  %v574_v37 = vmul.f32 %v1579_v19, %v539_v35  ;;  %v607_v41 = vadd.f32 %v591_v33, %v440_v36  ;;  %v447_v24 = vld [vmem:[%s1513_s20 + $0x20] sm:$0xff]  ;;  %v445_v36 = vld [vmem:[%s1513_s20 + $0x10] sm:$0xff] }
  0xeb   : > { %v592_v34 = vmul.f32 %v576_v30, %v457_v29  ;;  %924 = vmatpush3.xpose.msra.mxu0 %v609_v31  ;;  %v590_v42 = vmul.f32 %v574_v37, %v455_v39  ;;  %v446_v30 = vld [vmem:[%s1513_s20 + $0x18] sm:$0xff] }
  0xec   : > { %925 = vmatprep.subr.mxu0 %v1298_v6  ;;  %v534_v40 = vpop.permute.xlu0 %533  ;;  %v529_v45 = vpop.permute.xlu1 %528 }
  0xed   : > { %v608_v38 = vadd.f32 %v592_v34, %v441_v32  ;;  %v573_v43 = vmul.f32 %v1579_v19, %v534_v40  ;;  %v572_v48 = vmul.f32 %v1579_v19, %v529_v45  ;;  %v606_v49 = vadd.f32 %v590_v42, %v439_v46  ;;  %v431_v32 = vld [vmem:[%s1507_s7 + $0x20] sm:$0xff]  ;;  %v444_v42 = vld [vmem:[%s1513_s20 + $0x8] sm:$0xff] }
  0xef   : > { %926 = vmatpush3.xpose.msra.mxu0 %v608_v38  ;;  %v589_v47 = vmul.f32 %v573_v43, %v454_v44  ;;  %v588_v53 = vmul.f32 %v572_v48, %v453_v50  ;;  %v430_v38 = vld [vmem:[%s1507_s7 + $0x18] sm:$0xff]  ;;  %v429_v44 = vld [vmem:[%s1507_s7 + $0x10] sm:$0xff]  ;;  %v443_v48 = vld [vmem:[%s1513_s20] sm:$0xff] }
  0xf0   : > { %927 = vmatprep.subr.mxu0 %v1298_v6  ;;  %v524_v51 = vpop.permute.xlu0 %523  ;;  %v519_v57 = vpop.permute.xlu1 %518 }
  0xf1   : > { %v571_v54 = vmul.f32 %v1579_v19, %v524_v51  ;;  %v605_v55 = vadd.f32 %v589_v47, %v438_v52  ;;  %v570_v60 = vmul.f32 %v1579_v19, %v519_v57  ;;  %v604_v61 = vadd.f32 %v588_v53, %v437_v58  ;;  %v427_v52 = vld [vmem:[%s1507_s7] sm:$0xff] }
  0xf3   : > { %928 = vmatpush3.xpose.msra.mxu0 %v607_v41  ;;  %v587_v59 = vmul.f32 %v571_v54, %v452_v56  ;;  %v586_v1 = vmul.f32 %v570_v60, %v451_v62  ;;  %v611_v54 = vld [vmem:[%s1540_s1] sm:$0xff] }
  0xf4   : > { %929 = vmatprep.subr.mxu0 %v1298_v6  ;;  %v514_v63 = vpop.permute.xlu0 %513  ;;  %v509_v5 = vpop.permute.xlu1 %508 }
  0xf5   : > { %v569_v2 = vmul.f32 %v1579_v19, %v514_v63  ;;  %v603_v3 = vadd.f32 %v587_v59, %v436_v0  ;;  %v568_v9 = vmul.f32 %v1579_v19, %v509_v5  ;;  %v602_v10 = vadd.f32 %v586_v1, %v435_v7 }
  0xf7   : > { %930 = vmatpush3.xpose.msra.mxu0 %v606_v49  ;;  %v585_v8 = vmul.f32 %v569_v2, %v450_v4  ;;  %v584_v14 = vmul.f32 %v568_v9, %v449_v11  ;;  %v428_v49 = vld [vmem:[%s1507_s7 + $0x8] sm:$0xff] }
  0xf8   : > { %931 = vmatprep.subr.mxu0 %v1298_v6  ;;  %v504_v12 = vpop.permute.xlu0 %503  ;;  %v499_v18 = vpop.permute.xlu1 %498 }
  0xf9   : > { %v567_v15 = vmul.f32 %v1579_v19, %v504_v12  ;;  %v601_v16 = vadd.f32 %v585_v8, %v434_v13  ;;  %v566_v22 = vmul.f32 %v1579_v19, %v499_v18  ;;  %v600_v23 = vadd.f32 %v584_v14, %v433_v20 }
  0xfb   : > { %932 = vmatpush3.xpose.msra.mxu0 %v605_v55  ;;  %v583_v21 = vmul.f32 %v567_v15, %v448_v17  ;;  %v582_v27 = vmul.f32 %v566_v22, %v447_v24  ;;  %v610_v55 = vld [vmem:[#allocation2] sm:$0xff] }
  0xfc   : > { %933 = vmatprep.subr.mxu0 %v1298_v6  ;;  %v494_v25 = vpop.permute.xlu0 %493  ;;  %v489_v31 = vpop.permute.xlu1 %488 }
  0xfd   : > { %v565_v28 = vmul.f32 %v1579_v19, %v494_v25  ;;  %v599_v29 = vadd.f32 %v583_v21, %v432_v26  ;;  %v564_v34 = vmul.f32 %v1579_v19, %v489_v31  ;;  %v598_v35 = vadd.f32 %v582_v27, %v431_v32 }
  0xff   : > { %934 = vmatpush3.xpose.msra.mxu0 %v604_v61  ;;  %v581_v33 = vmul.f32 %v565_v28, %v446_v30  ;;  %v580_v39 = vmul.f32 %v564_v34, %v445_v36 }
 0x100   : > { %935 = vmatprep.subr.mxu0 %v1298_v6  ;;  %v484_v37 = vpop.permute.xlu0 %483  ;;  %v479_v43 = vpop.permute.xlu1 %478 }
 0x101   : > { %v563_v40 = vmul.f32 %v1579_v19, %v484_v37  ;;  %v597_v41 = vadd.f32 %v581_v33, %v430_v38  ;;  %v562_v46 = vmul.f32 %v1579_v19, %v479_v43  ;;  %v596_v47 = vadd.f32 %v580_v39, %v429_v44 }
 0x103   : > { %936 = vmatpush3.xpose.msra.mxu0 %v603_v3  ;;  %v579_v45 = vmul.f32 %v563_v40, %v444_v42  ;;  %v578_v50 = vmul.f32 %v562_v46, %v443_v48 }
 0x104   : > { %937 = vmatprep.subr.mxu0 %v1298_v6 }
 0x105   : > { %v595_v51 = vadd.f32 %v579_v45, %v428_v49  ;;  %v594_v53 = vadd.f32 %v578_v50, %v427_v52 }
 0x107   : > { %938 = vmatpush3.xpose.msra.mxu0 %v602_v10 }
 0x108   : > { %939 = vmatprep.subr.mxu0 %v1298_v6 }
 0x10b   : > { %940 = vmatpush3.xpose.msra.mxu0 %v601_v16 }
 0x10c   : > { %941 = vmatprep.subr.mxu0 %v1298_v6 }
 0x10f   : > { %942 = vmatpush3.xpose.msra.mxu0 %v600_v23 }
 0x110   : > { %943 = vmatprep.subr.mxu0 %v1298_v6 }
 0x113   : > { %944 = vmatpush3.xpose.msra.mxu0 %v599_v29 }
 0x114   : > { %945 = vmatprep.subr.mxu0 %v1298_v6 }
 0x117   : > { %946 = vmatpush3.xpose.msra.mxu0 %v598_v35 }
 0x118   : > { %947 = vmatprep.subr.mxu0 %v1298_v6 }
 0x11b   : > { %948 = vmatpush3.xpose.msra.mxu0 %v597_v41 }
 0x11c   : > { %949 = vmatprep.subr.mxu0 %v1298_v6 }
 0x11f   : > { %950 = vmatpush3.xpose.msra.mxu0 %v596_v47 }
 0x120   : > { %951 = vmatprep.subr.mxu0 %v1298_v6 }
 0x123   : > { %952 = vmatpush3.xpose.msra.mxu0 %v595_v51 }
 0x124   : > { %953 = vmatprep.subr.mxu0 %v1298_v6 }
 0x127   : > { %954 = vmatpush3.xpose.msra.mxu0 %v594_v53 }
 0x12a   : > { %956 = vmatmul.mubr.f32.vlgmr.msra.gmra.mxu0 %v611_v54 }
 0x1e9   : > { %687 = sbr.rel (%p899_p5) target bundleno = 504 (0x1f8), region = 60 }
 0x1ea   : > { %v678_v56 = vpop.f32.mrf.mxu0 }
 0x1eb   : > { %v682_v57 = vadd.f32 %v678_v56, %v610_v55 }
 0x1ec   : > { %v957_v19 = vpop.f32.mrf.mxu0 }
 0x1ed   : > { %683 = vst [vmem:[#allocation2] sm:$0xff] %v682_v57 }
 0x1ee   : > { %v900_v6 = vld [vmem:[%s421_s12] ss:$0 sm:$0xff] }
 0x1f4   : > { %v688_v58 = vld [vmem:[#allocation2] sm:$0xff] }
 0x1f5   : > { %v696_v59 = vadd.f32 %v900_v6, %v688_v58 }
 0x1f7   : > { %697 = vst [vmem:[%s399_s13] sm:$0xff] %v696_v59 }
 0x1f8 PF: > { %s902_s7 = sshll.u32 %s1273_s29, 1  ;;  %s714_s19 = sshll.u32 %s399_s13, 4  ;;  %s715_s19 = int_to_ptr.vmem [resolvable:$true] %s714_s19 }
 0x1f9   : > { %s710_s27 = sadd.s32 %s1269_s28, %s902_s7  ;;  %s1768_s1 = sld [smem:[#allocation25_spill]] }
 0x1fa   : > { %s903_s17 = sshll.u32 %s710_s27, 7  ;;  %s1769_s14 = sand.u32 1, %s1245_s22  }
 0x1fb   : > { %s699_s21 = scalar_lea.sflag [#allocation5], %s1769_s14  ;;  %s1149_s11 = scalar_lea.vmem %s715_s19, 128 }
 0x1fc   : > { %p1150_p9 = scmp.ne.s32.totalorder %s715_s19, %s1149_s11  ;;  %s1300_s24 = smov [#allocation8]  }
 0x1fd   : > { %s1153_s10 = sshll.u32 %s1300_s24, 4  ;;  %s1154_s10 = int_to_ptr.vmem [resolvable:$false] %s1153_s10 }
 0x1fe   : > { %p1151_p10 = pnand %p1150_p9, %p1446_p0  ;;  %s1155_s29 = scalar_lea.vmem %s1154_s10, 256 }
 0x1ff   : > { %s712_s8 = scalar_lea.hbm %s1768_s1, %s903_s17  ;;  %p1156_p12 = scmp.lt.s32.totalorder %s715_s19, %s1154_s10 }
 0x200   : > { %p1152_p11 = pneg %p1151_p10  ;;  %p1157_p13 = scmp.lt.s32.totalorder %s1155_s29, %s1149_s11 }
 0x202   : > { %p1158_p1 = por %p1157_p13, %p1156_p12 }
 0x204   : > { %p1159_p4 = pnand %p1158_p1, %p1152_p11 }
 0x206   : > { %1162 = shalt.err (!%p1159_p4)
}
 0x207   : > { %s1163_s28 = scalar_lea.hbm %s712_s8, 128  ;;  %s1167_s13 = scalar_lea.hbm %s1768_s1, 512 }
 0x208   : > { %p1164_p6 = scmp.ne.s32.totalorder %s712_s8, %s1163_s28  ;;  %p1168_p8 = scmp.lt.s32.totalorder %s712_s8, %s1768_s1 }
 0x209   : > { %p1169_p5 = scmp.lt.s32.totalorder %s1167_s13, %s1163_s28 }
 0x20a   : > { %p1165_p7 = pnand %p1164_p6, %p1446_p0 }
 0x20b   : > { %p1170_p9 = por %p1169_p5, %p1168_p8 }
 0x20c   : > { %p1166_p3 = pneg %p1165_p7 }
 0x20e   : > { %p1171_p10 = pnand %p1170_p9, %p1166_p3 }
 0x210   : > { %1174 = shalt.err (!%p1171_p10)
}
 0x211   : > { %965 = dma.vmem_to_hbm [thread:$0]  (%p1446_p0), %s715_s19, 128, %s712_s8, %s699_s21  }
 0x212 PF: > { %s1770_s20 = sld [smem:[#allocation12_spill]]  ;;  %p979_p11 = scmp.ge.s32.totalorder %s1289_s9, 2 }
 0x214   : > { %p975_p12 = pnand %p979_p11, %p1455_p2 }
 0x216   : > { %p976_p13 = pneg %p975_p12 }
 0x218   : > { %s726_s7 = sand.u32 1, %s1770_s20  }
 0x219   : > { %s727_s27 = scalar_lea.sflag [#allocation5], %s726_s7 }
 0x21a   : > { %1236 = dma.done.wait (%p976_p13), %s727_s27, 128  }
 0x21b   : > { %1238 = vsyncadd (%p976_p13), %s727_s27, 4294967168  ;;  %s25_s9 = sadd.s32 1, %s1289_s9   ;;  %s1773_s16 = sld [smem:[#allocation13_spill]] }
 0x21c   : > { %p1679_p1 = scmp.ge.s32.totalorder %s25_s9, 14   ;;  %s1774_s23 = sld [smem:[#allocation22_spill]] }
 0x21d   : > { %s1775_s19 = sld [smem:[#allocation14_spill]]  ;;  %s1783_s21 = smov %s1245_s22 }
 0x21e   : > { %s1776_s26 = sld [smem:[#allocation21_spill]]  ;;  %s1785_s24 = smov %s1257_s25 }
 0x21f   : > { %s1777_s27 = sld [smem:[#allocation15_spill]] }
 0x220   : > { %s1778_s28 = sld [smem:[#allocation16_spill]]  ;;  %24 = sbr.rel (!%p1679_p1) target bundleno = 15 (0xf), region = 122 }
 0x221   : > { %s1779_s29 = sld [smem:[#allocation17_spill]]  ;;  %s1784_s22 = smov %s1773_s16 }
 0x222   : > { %s1780_s30 = sld [smem:[#allocation18_spill]] }
 0x223   : > { %s1781_s7 = sld [smem:[#allocation19_spill]]  ;;  %s1786_s25 = smov %s1775_s19 }
 0x224   : > { %s1782_s8 = sld [smem:[#allocation20_spill]] }
 0x225   :  { %732 = vsyncpa [#allocation4], 1 }
 0x226   :  { %734 = vsyncpa [#allocation4 + $0x1], 1 }
 0x227   :  { %735 = vsyncpa [#allocation7], 1 }
 0x228   :  { %737 = vsyncpa [#allocation7 + $0x1], 1 }
 0x229   :  { %738 = vsyncpa [#allocation5], 1 }
 0x22a   :  { %740 = vsyncpa [#allocation5 + $0x1], 1 }

</bundles_post_ra>
